<compile_context>
chip_gen: v7x
topology: tpu7x:2x2x1
jax: 0.10.0
libtpu: 0.0.40
codegen_flags: <defaults>
</compile_context>

<pallas_src>
import functools
import math

import jax
import jax.numpy as jnp
from jax.experimental import pallas as pl
from jax.experimental.pallas import tpu as pltpu


def _dropout_kernel(x_ref, bits_ref, o_ref, *, threshold):
    # keep element iff uniform >= p   <=>   bits >= round(p * 2**32)
    keep = bits_ref[...] >= jnp.uint32(threshold)          # (TR, cols) or (TR, 1)
    x = x_ref[...]
    o_ref[...] = jnp.where(keep, x, jnp.zeros_like(x)).astype(o_ref.dtype)


def _lane_dense_cols(total, fallback):
    """Largest 'nice' multiple of 128 that divides total; else fallback."""
    for cols in (4096, 2048, 1024, 512, 256, 128):
        if total % cols == 0:
            return cols
    return fallback


def _pick_row_tile(rows, bytes_per_row, target_bytes=4 * 1024 * 1024):
    """Row-tile that keeps a tile ~4 MiB, multiple of 8 sublanes (v7x-safe)."""
    tr = max(8, min(1024, target_bytes // max(1, bytes_per_row)))
    tr = (tr // 8) * 8
    if rows <= tr:
        return rows          # full extent -> always a legal block dim
    return tr                # multiple of 8; partial last block handled by Pallas


def input_dropout(x, p=0.0, *, emb_size=None, training=True, key=None):
    """Pallas implementation of InputDropout.forward.

    x: float array of shape (..., emb).  If `emb_size` is not None, whole
    embedding vectors are dropped with probability p; otherwise element-wise.
    `key` is a jax.random key (callers must thread a fresh key per step).
    """
    assert 0.0 <= p <= 1.0
    if (not training) or p == 0.0:
        return x
    if p >= 1.0:
        # uniform [0,1) draws are always < 1.0 -> everything is dropped
        return jnp.zeros_like(x)
    if key is None:
        key = jax.random.PRNGKey(0)

    orig_shape = x.shape
    emb = orig_shape[-1] if x.ndim >= 1 else 1
    rowwise = emb_size is not None
    # In the PyTorch module emb_size only builds a zeros vector that broadcasts
    # against x's last dim, so only its *presence* changes the result here.

    if rowwise:
        rows = max(1, math.prod(orig_shape[:-1]))
        cols = emb
        x2d = x.reshape(rows, cols)
        # one random word per row -> PRNG/bandwidth cost is 4 bytes/row only
        bits = jax.random.bits(key, (rows, 1), dtype=jnp.uint32)
        bits_cols = 1
    else:
        total = x.size
        cols = _lane_dense_cols(total, emb)     # lane-dense, unmasked stores
        rows = total // cols
        x2d = x.reshape(rows, cols)
        bits = jax.random.bits(key, (rows, cols), dtype=jnp.uint32)
        bits_cols = cols

    threshold = min(max(int(round(p * 2.0 ** 32)), 0), 2 ** 32 - 1)

    bytes_per_row = cols * x.dtype.itemsize * 2 + 4 * bits_cols  # in + out + bits
    tr = _pick_row_tile(rows, bytes_per_row)

    kernel = functools.partial(_dropout_kernel, threshold=threshold)

    out = pl.pallas_call(
        kernel,
        out_shape=jax.ShapeDtypeStruct((rows, cols), x.dtype),
        grid=(pl.cdiv(rows, tr),),
        in_specs=[
            pl.BlockSpec((tr, cols), lambda i: (i, 0)),        # activations
            pl.BlockSpec((tr, bits_cols), lambda i: (i, 0)),   # random words
        ],
        out_specs=pl.BlockSpec((tr, cols), lambda i: (i, 0)),
        compiler_params=pltpu.CompilerParams(
            dimension_semantics=("parallel",)),                # v7x: 2 TCs
    )(x2d, bits)

    return out.reshape(orig_shape)


if __name__ == "__main__":
    root = jax.random.PRNGKey(0)
    kx, k_row, k_elem = jax.random.split(root, 3)
    B, S, D = 2, 8, 32
    x = jax.random.normal(kx, (B, S, D), dtype=jnp.float32)
    p = 0.5

    # 1) training + emb_size -> whole-embedding (row-wise) dropout
    y_row = jax.block_until_ready(
        input_dropout(x, p=p, emb_size=D, training=True, key=k_row))
    row_zero = jnp.all(y_row == 0.0, axis=-1)
    row_same = jnp.all(y_row == x, axis=-1)
    assert bool(jnp.all(row_zero | row_same)), "row-wise dropout broke row atomicity"

    # 2) training + no emb_size -> element-wise dropout
    y_elem = jax.block_until_ready(
        input_dropout(x, p=p, emb_size=None, training=True, key=k_elem))
    elem_zero = y_elem == 0.0
    elem_same = y_elem == x
    assert bool(jnp.all(elem_zero | elem_same)), "element-wise dropout altered values"
    frac = float(elem_zero.mean())
    assert 0.2 < frac < 0.8, f"drop fraction {frac} far from p={p}"

    # 3) eval mode -> identity
    y_eval = jax.block_until_ready(input_dropout(x, p=p, emb_size=D, training=False))
    assert bool(jnp.all(y_eval == x)), "eval mode must be identity"

    print("KERNEL_OK")
</pallas_src>

<mosaic_0001>
module attributes {stable_mosaic.version = 11 : i64} {
  func.func @_dropout_kernel(%arg0: i32, %arg1: memref<16x32xf32, #tpu.memory_space<vmem>>, %arg2: memref<16x1xi32, #tpu.memory_space<vmem>>, %arg3: memref<16x32xf32, #tpu.memory_space<vmem>>) attributes {dimension_semantics = [#tpu.dimension_semantics<parallel>], iteration_bounds = array<i64: 1>, scalar_prefetch = 0 : i64, scratch_operands = 0 : i64, tpu.core_type = #tpu.core_type<tc>, window_params = [{transform_indices = @transform_0, window_bounds = array<i64: 16, 32>}, {transform_indices = @transform_1, window_bounds = array<i64: 16, 1>}, {transform_indices = @transform_2, window_bounds = array<i64: 16, 32>}]} {
    %c0 = arith.constant 0 : index
    %c0_0 = arith.constant 0 : index
    %0 = vector.load %arg2[%c0, %c0_0] : memref<16x1xi32, #tpu.memory_space<vmem>>, vector<16x1xi32>
    %c-2147483648_i32 = arith.constant -2147483648 : i32
    %1 = vector.broadcast %c-2147483648_i32 : i32 to vector<16x1xi32>
    %2 = arith.cmpi uge, %0, %1 : vector<16x1xi32>
    %c0_1 = arith.constant 0 : index
    %c0_2 = arith.constant 0 : index
    %3 = vector.load %arg1[%c0_1, %c0_2] : memref<16x32xf32, #tpu.memory_space<vmem>>, vector<16x32xf32>
    %cst = arith.constant 0.000000e+00 : f32
    %4 = vector.broadcast %cst : f32 to vector<16x32xf32>
    %5 = vector.shape_cast %2 : vector<16x1xi1> to vector<16x1xi1>
    %6 = vector.broadcast %5 : vector<16x1xi1> to vector<16x32xi1>
    %7 = arith.select %6, %3, %4 : vector<16x32xi1>, vector<16x32xf32>
    %c0_3 = arith.constant 0 : index
    %c0_4 = arith.constant 0 : index
    %8 = vector.load %arg3[%c0_3, %c0_4] : memref<16x32xf32, #tpu.memory_space<vmem>>, vector<16x32xf32>
    tpu.vector_store %arg3[%c0_3, %c0_4], %7 {strides = array<i32>} : memref<16x32xf32, #tpu.memory_space<vmem>>, vector<16x32xf32>,
    return
  }
  func.func @transform_0(%arg0: i32) -> (i32, i32) {
    %c0_i32 = arith.constant 0 : i32
    %c0_i32_0 = arith.constant 0 : i32
    return %arg0, %c0_i32 : i32, i32
  }
  func.func @transform_1(%arg0: i32) -> (i32, i32) {
    %c0_i32 = arith.constant 0 : i32
    %c0_i32_0 = arith.constant 0 : i32
    return %arg0, %c0_i32 : i32, i32
  }
  func.func @transform_2(%arg0: i32) -> (i32, i32) {
    %c0_i32 = arith.constant 0 : i32
    %c0_i32_0 = arith.constant 0 : i32
    return %arg0, %c0_i32 : i32, i32
  }
}

</mosaic_0001>

<bundles_post_ra>
// kernel: tpu_custom_call.1
= control target key start
LH: loop header
LB: loop body
LE: loop exit
PB: predicated region body
PF: predicated region fallthrough
CT: control target
= control target key end

     0   :  { %v78_v2 = vmov 0   ;;  %s121_s0 = inlined_call_operand.vmem [shape: f32[16,32], index: 0, kind: input, shape index: {}]   ;;  %s122_s1 = inlined_call_operand.vmem [shape: u32[16,1], index: 1, kind: input, shape index: {}]   ;;  %s123_s2 = inlined_call_operand.hbm [shape: f32[16,32], index: 2, kind: output, shape index: {}]  }
   0x1   :  { %v12_v0 = vld [vmem:[%s122_s1] sm:$0xff]  ;;  %v13_v1 = vld [vmem:[%s122_s1 + $0x8] sm:$0xff]  ;;  %53 = vset.pattern.permute.xlu0 %v78_v2 }
   0x2   :  { %vm14_vm0 = vcmp.ge.u32.totalorder %v12_v0, 2147483648  ;;  %vm15_vm1 = vcmp.ge.u32.totalorder %v13_v1, 2147483648 }
   0x3   :  { %7 = vsyncpa [#allocation3], 0  ;;  %v18_v3 = vsel %vm14_vm0, 1, %v78_v2  ;;  %v19_v4 = vsel %vm15_vm1, 1, %v78_v2  ;;  %v16_v5 = vld [vmem:[%s121_s0] sm:$0xff]  ;;  %vm30_vm2 = vcmask 261120  }
   0x4   :  { %21 = vperm.xlu0 %53, %v18_v3   ;;  %s79_s15 = smov [#allocation2]   ;;  %v17_v8 = vld [vmem:[%s121_s0 + $0x8] sm:$0xff] }
   0x5   :  { %s38_s16 = sshll.u32 %s79_s15, 4  ;;  %s39_s16 = int_to_ptr.vmem [resolvable:$true] %s38_s16 }
   0x6   :  { %s54_s18 = scalar_lea.vmem %s39_s16, 256  ;;  %p59_p1 = scmp.lt.s32.totalorder %s39_s16, %s39_s16 }
   0x7   :  { %p55_p0 = scmp.ne.s32.totalorder %s39_s16, %s54_s18  ;;  %p60_p2 = scmp.lt.s32.totalorder %s54_s18, %s54_s18 }
   0x8   :  { %24 = vperm.xlu0 %53, %v19_v4  }
   0x9   :  { %p61_p3 = por %p60_p2, %p59_p1 }
   0xb   :  { %p62_p4 = pnand %p61_p3, %p55_p0 }
  0x83   :  { %v22_v6 = vpop.permute.xlu0 %21 }
  0x84   :  { %vm26_vm3 = vcmp.eq.s32.totalorder %v22_v6, 1 }
  0x85   :  { %v28_v7 = vsel %vm26_vm3, %v16_v5, 0.0 }
  0x86   :  { %31 = vst.msk [vmem:[#allocation2] sm:$0xff] %vm30_vm2, %v28_v7 }
  0x87   :  { %v25_v9 = vpop.permute.xlu0 %24 }
  0x88   :  { %vm27_vm4 = vcmp.eq.s32.totalorder %v25_v9, 1 }
  0x89   :  { %v29_v10 = vsel %vm27_vm4, %v17_v8, 0.0 }
  0x8a   :  { %32 = vst.msk [vmem:[#allocation2 + $0x8] sm:$0xff] %vm30_vm2, %v29_v10 }
  0x8b   :  { %65 = shalt.err (!%p62_p4)
}
  0x8c   :  { %s66_s21 = scalar_lea.hbm %s123_s2, 256 }
  0x8d   :  { %p67_p5 = scmp.ne.s32.totalorder %s123_s2, %s66_s21  ;;  %p70_p6 = scmp.lt.u32.totalorder %s66_s21, %s123_s2 }
  0x8f   :  { %p72_p7 = pnand %p70_p6, %p67_p5 }
  0x91   :  { %75 = shalt.err (!%p72_p7)
}
  0x92   :  { %s80_s25 = smov 128   ;;  %s81_s26 = smov 8  }
  0x93   :  { %44 = dma.vmem_to_hbm [thread:$0]  %s39_s16, 256, %s123_s2, [#allocation3], %s80_s25, %s80_s25, %s81_s26  }
  0x94   :  { %76 = dma.done.wait [#allocation3], 256  }
  0x95   :  { %77 = vsyncadd [#allocation3], 4294967040 }
  0x96   :  { %48 = vsyncpa [#allocation3], 1 }

</bundles_post_ra>
